<compile_context>
chip_gen: v7x
topology: tpu7x:2x2x1
jax: 0.10.0
libtpu: 0.0.40
codegen_flags: <defaults>
</compile_context>

<pallas_src>
import functools

import jax
import jax.numpy as jnp
from jax import lax
from jax.experimental import pallas as pl
from jax.experimental.pallas import tpu as pltpu


def _sincos_kernel(angle2_ref, out_ref):
    # angle2_ref: (1, 2*Dh) resident VMEM (angle duplicated along lanes).
    # out_ref:    (tr, 2*Dh) lane-dense output block; cols [0, Dh) hold sin,
    #             cols [Dh, 2*Dh) hold cos.
    tr, d2 = out_ref.shape
    dh = d2 // 2
    base = pl.program_id(0) * tr
    pos = (lax.broadcasted_iota(jnp.int32, (tr, d2), 0) + base).astype(jnp.float32)
    col = lax.broadcasted_iota(jnp.int32, (tr, d2), 1)
    phase = pos * angle2_ref[...]
    out_ref[...] = jnp.where(col < dh, jnp.sin(phase), jnp.cos(phase))


def _decay_mask_kernel(decay_ref, mask_ref, *, head_axis, row_axis):
    # decay_ref: (H,) f32 in SMEM (whole array, scalar-indexed; no per-step DMA).
    # mask_ref:  (1, tr, S) output block for head h, row tile r.
    #
    # Rank-1 factorisation:  exp((i-j)*d) = exp((i-base)*d) * exp((base-j)*d),
    # with base = r*tr, so only ~tr + S exps per tile instead of tr*S.
    h = pl.program_id(head_axis)
    r = pl.program_id(row_axis)
    _, tr, s = mask_ref.shape
    base = r * tr                                       # traced int32 scalar
    d = decay_ref[h]                                    # negative f32 scalar

    li = lax.broadcasted_iota(jnp.int32, (tr, 1), 0)    # i - base, (tr, 1)
    cj = lax.broadcasted_iota(jnp.int32, (1, s), 1)     # j,        (1, S)

    row_exp = jnp.exp(li.astype(jnp.float32) * d)                     # (tr, 1)
    col_e = (base.astype(jnp.float32) - cj.astype(jnp.float32)) * d   # (1, S)
    # Clamp the (masked-away) upper-triangle column exponents so exp never
    # overflows to +inf.  Valid lower-triangle entries have
    # col_e <= (tr-1)*|d| < ~17 for tr<=1024, |d|<=log(32/31), so the clamp
    # never touches them.
    col_exp = jnp.exp(jnp.minimum(col_e, jnp.float32(75.0)))          # (1, S)

    keep = (li + base) >= cj                                          # (tr, S)
    vals = jnp.where(keep, row_exp * col_exp, jnp.float32(0.0))       # (tr, S)

    # Exact per-row denominator (diagonal term guarantees denom >= ~1), then a
    # single rsqrt per row + broadcast multiply instead of a full-tile divide.
    denom = jnp.sum(vals, axis=-1, keepdims=True)                     # (tr, 1)
    mask_ref[0, :, :] = (vals * lax.rsqrt(denom)).astype(mask_ref.dtype)


def make_retnet_rel_pos_buffers(decoder_retention_heads, query_key_dim):
    """Deterministic buffers exactly as in RetNetRelPos.__init__."""
    half = query_key_dim // decoder_retention_heads // 2
    angle = 1.0 / (10000.0 ** jnp.linspace(0.0, 1.0, half, dtype=jnp.float32))
    angle = jnp.repeat(angle, 2)                        # [a0,a0,a1,a1,...]
    decay = jnp.log(1.0 - 2.0 ** (-5.0 - jnp.arange(
        decoder_retention_heads, dtype=jnp.float32)))
    return angle.astype(jnp.float32), decay.astype(jnp.float32)


def retnet_rel_pos(angle, decay, slen, activate_recurrent=False, *,
                   row_tile=None, mask_dtype=jnp.float32):
    """Forward pass of RetNetRelPos. Returns ((sin, cos), mask_or_decay).

    mask_dtype can be set to jnp.bfloat16 if the downstream consumer accepts
    it (halves the dominant HBM write); internal math stays f32 either way.
    """
    if activate_recurrent:
        # TODO(synk): recurrent branch is a handful of scalar ops; kept in plain JAX.
        sin = jnp.sin(angle * (slen - 1))
        cos = jnp.cos(angle * (slen - 1))
        return (sin, cos), jnp.exp(decay)

    heads = decay.shape[0]
    dh = angle.shape[0]

    # ---------------- sin / cos: one fused lane-dense (slen, 2*dh) slab ------
    tr_sc = slen if slen <= 4096 else 4096              # single step for typical slen
    n_sc = pl.cdiv(slen, tr_sc)
    angle2 = jnp.concatenate([angle, angle]).reshape(1, 2 * dh)

    sincos = pl.pallas_call(
        _sincos_kernel,
        out_shape=jax.ShapeDtypeStruct((slen, 2 * dh), jnp.float32),
        grid_spec=pltpu.PrefetchScalarGridSpec(
            num_scalar_prefetch=0,
            grid=(n_sc,),
            in_specs=[pl.BlockSpec((1, 2 * dh), lambda r: (0, 0))],
            out_specs=pl.BlockSpec((tr_sc, 2 * dh), lambda r: (r, 0)),
        ),
        compiler_params=pltpu.CompilerParams(dimension_semantics=("parallel",)),
        cost_estimate=pl.CostEstimate(
            flops=4 * slen * dh,
            transcendentals=4 * slen * dh,
            bytes_accessed=4 * (2 * slen * dh + 2 * dh)),
    )(angle2)
    sin = sincos[:, :dh]
    cos = sincos[:, dh:]

    # ---------------- decay mask ---------------------------------------------
    if row_tile is None:
        # Keep each (1, tr, slen) f32 block <= 4 MiB (8 MiB double-buffered):
        # safe under v5e's 16 MiB / v7x's 32 MiB default scoped VMEM, and large
        # enough (tr=512..1024 for slen<=4096) to amortize per-step overhead.
        max_block_bytes = 4 * 1024 * 1024
        cap = max(8, (max_block_bytes // (slen * 4)) // 8 * 8)
    else:
        cap = max(8, row_tile)
    tr = slen if slen <= cap else cap
    n_row_blocks = pl.cdiv(slen, tr)

    # Put the larger parallel axis first so a megacore (v7x) split stays balanced.
    if n_row_blocks >= heads:
        grid = (n_row_blocks, heads)
        kernel = functools.partial(_decay_mask_kernel, head_axis=1, row_axis=0)
        out_spec = pl.BlockSpec((1, tr, slen), lambda r, h: (h, r, 0))
    else:
        grid = (heads, n_row_blocks)
        kernel = functools.partial(_decay_mask_kernel, head_axis=0, row_axis=1)
        out_spec = pl.BlockSpec((1, tr, slen), lambda h, r: (h, r, 0))

    out_bytes = jnp.dtype(mask_dtype).itemsize * heads * slen * slen
    mask = pl.pallas_call(
        kernel,
        out_shape=jax.ShapeDtypeStruct((heads, slen, slen), mask_dtype),
        grid_spec=pltpu.PrefetchScalarGridSpec(
            num_scalar_prefetch=0,
            grid=grid,
            in_specs=[pl.BlockSpec(memory_space=pltpu.MemorySpace.SMEM)],
            out_specs=out_spec,
        ),
        compiler_params=pltpu.CompilerParams(
            dimension_semantics=("parallel", "parallel")),
        cost_estimate=pl.CostEstimate(
            flops=5 * heads * slen * slen,
            transcendentals=heads * (slen + (slen * slen) // tr),
            bytes_accessed=int(out_bytes) + 4 * heads),
    )(decay)

    return (sin, cos), mask


def retnet_rel_pos_ref(angle, decay, slen, activate_recurrent=False):
    """Pure-JAX reference mirroring the PyTorch module."""
    if activate_recurrent:
        sin = jnp.sin(angle * (slen - 1))
        cos = jnp.cos(angle * (slen - 1))
        return (sin, cos), jnp.exp(decay)
    index = jnp.arange(slen, dtype=jnp.float32)
    sin = jnp.sin(index[:, None] * angle[None, :])
    cos = jnp.cos(index[:, None] * angle[None, :])
    tri = jnp.tril(jnp.ones((slen, slen), dtype=bool))
    diff = index[:, None] - index[None, :]
    mask = jnp.where(tri, diff, jnp.inf)
    mask = jnp.exp(mask * decay[:, None, None])
    mask = jnp.nan_to_num(mask)
    mask = mask / jnp.sqrt(jnp.sum(mask, axis=-1, keepdims=True))
    return (sin, cos), mask


if __name__ == "__main__":
    # Small config: heads=4, query_key_dim=256 -> head_dim=64; slen=16.
    decoder_embed_dim = 512            # unused by the module's buffers/forward
    decoder_retention_heads = 4
    query_key_dim = 256
    slen = 16

    # PRNGKey(0) kept per harness contract; the module has no random state
    # (its buffers are deterministic functions of the config).
    _ = jax.random.PRNGKey(0)

    angle, decay = make_retnet_rel_pos_buffers(decoder_retention_heads,
                                               query_key_dim)

    (sin, cos), mask = retnet_rel_pos(angle, decay, slen)
    (sin, cos), mask = jax.block_until_ready(((sin, cos), mask))

    (sin_r, cos_r), mask_r = retnet_rel_pos_ref(angle, decay, slen)

    assert sin.shape == (slen, angle.shape[0])
    assert cos.shape == (slen, angle.shape[0])
    assert mask.shape == (decoder_retention_heads, slen, slen)
    assert jnp.allclose(sin, sin_r, atol=1e-4, rtol=1e-4), "sin mismatch"
    assert jnp.allclose(cos, cos_r, atol=1e-4, rtol=1e-4), "cos mismatch"
    assert jnp.allclose(mask, mask_r, atol=1e-4, rtol=1e-4), "mask mismatch"

    # Recurrent branch (plain JAX scalar path).
    (sin_rc, cos_rc), dexp = retnet_rel_pos(angle, decay, slen,
                                            activate_recurrent=True)
    (sin_rr, cos_rr), dexp_r = retnet_rel_pos_ref(angle, decay, slen,
                                                  activate_recurrent=True)
    assert jnp.allclose(sin_rc, sin_rr, atol=1e-5, rtol=1e-5)
    assert jnp.allclose(cos_rc, cos_rr, atol=1e-5, rtol=1e-5)
    assert jnp.allclose(dexp, dexp_r, atol=1e-5, rtol=1e-5)

    print("KERNEL_OK")
</pallas_src>

<mosaic_0001>
module attributes {stable_mosaic.version = 11 : i64} {
  func.func @_sincos_kernel(%arg0: i32, %arg1: memref<1x128xf32, #tpu.memory_space<vmem>>, %arg2: memref<16x128xf32, #tpu.memory_space<vmem>>) attributes {dimension_semantics = [#tpu.dimension_semantics<parallel>], iteration_bounds = array<i64: 1>, scalar_prefetch = 0 : i64, scratch_operands = 0 : i64, tpu.core_type = #tpu.core_type<tc>, window_params = [{pipeline_mode = #tpu.pipeline_mode<synchronous>, transform_indices = @transform_0, window_bounds = array<i64: 1, 128>}, {transform_indices = @transform_1, window_bounds = array<i64: 16, 128>}]} {
    %c16_i32 = arith.constant 16 : i32
    %0 = arith.muli %arg0, %c16_i32 : i32
    %1 = tpu.iota {dimensions = array<i32: 0>} : vector<16x128xi32>
    %2 = vector.broadcast %0 : i32 to vector<16x128xi32>
    %3 = arith.addi %1, %2 : vector<16x128xi32>
    %4 = arith.sitofp %3 : vector<16x128xi32> to vector<16x128xf32>
    %5 = tpu.iota {dimensions = array<i32: 1>} : vector<16x128xi32>
    %c0 = arith.constant 0 : index
    %c0_0 = arith.constant 0 : index
    %6 = vector.load %arg1[%c0, %c0_0] : memref<1x128xf32, #tpu.memory_space<vmem>>, vector<1x128xf32>
    %7 = vector.broadcast %6 : vector<1x128xf32> to vector<16x128xf32>
    %8 = arith.mulf %4, %7 : vector<16x128xf32>
    %c64_i32 = arith.constant 64 : i32
    %9 = vector.broadcast %c64_i32 : i32 to vector<16x128xi32>
    %10 = arith.cmpi slt, %5, %9 : vector<16x128xi32>
    %11 = math.sin %8 : vector<16x128xf32>
    %12 = math.cos %8 : vector<16x128xf32>
    %13 = arith.select %10, %11, %12 : vector<16x128xi1>, vector<16x128xf32>
    %c0_1 = arith.constant 0 : index
    %c0_2 = arith.constant 0 : index
    %14 = vector.load %arg2[%c0_1, %c0_2] : memref<16x128xf32, #tpu.memory_space<vmem>>, vector<16x128xf32>
    tpu.vector_store %arg2[%c0_1, %c0_2], %13 {strides = array<i32>} : memref<16x128xf32, #tpu.memory_space<vmem>>, vector<16x128xf32>,
    return
  }
  func.func @transform_0(%arg0: i32) -> (i32, i32) {
    %c0_i32 = arith.constant 0 : i32
    %c0_i32_0 = arith.constant 0 : i32
    %c0_i32_1 = arith.constant 0 : i32
    return %c0_i32, %c0_i32_0 : i32, i32
  }
  func.func @transform_1(%arg0: i32) -> (i32, i32) {
    %c0_i32 = arith.constant 0 : i32
    %c0_i32_0 = arith.constant 0 : i32
    return %arg0, %c0_i32 : i32, i32
  }
}

</mosaic_0001>

<bundles_post_ra>
// kernel: tpu_custom_call.1
= control target key start
LH: loop header
LB: loop body
LE: loop exit
PB: predicated region body
PF: predicated region fallthrough
CT: control target
= control target key end

     0   :  { %6 = vsyncpa [#allocation3], 0  ;;  %s686_s0 = inlined_call_operand.hbm [shape: f32[1,128], index: 0, kind: input, shape index: {}]   ;;  %s687_s1 = inlined_call_operand.hbm [shape: f32[16,128], index: 1, kind: output, shape index: {}]  }
   0x1   :  { %7 = vsyncpa [#allocation4], 0  ;;  %s568_s6 = smov [#allocation2]   ;;  %s520_s10 = scalar_lea.hbm %s686_s0, 16 }
   0x2   :  { %s14_s7 = sshll.u32 %s568_s6, 4  ;;  %p521_p0 = scmp.ne.s32.totalorder %s686_s0, %s520_s10  ;;  %s15_s7 = int_to_ptr.vmem [resolvable:$true] %s14_s7 }
   0x3   :  { %p524_p1 = scmp.lt.u32.totalorder %s520_s10, %s686_s0 }
   0x5   :  { %p526_p2 = pnand %p524_p1, %p521_p0 }
   0x7   :  { %529 = shalt.err (!%p526_p2)
}
   0x8   :  { %s530_s15 = scalar_lea.vmem %s15_s7, 16  ;;  %s534_s16 = scalar_lea.vmem %s15_s7, 32 }
   0x9   :  { %p531_p3 = scmp.ne.s32.totalorder %s15_s7, %s530_s15  ;;  %p535_p4 = scmp.lt.s32.totalorder %s15_s7, %s15_s7 }
   0xa   :  { %p536_p5 = scmp.lt.s32.totalorder %s534_s16, %s530_s15 }
   0xc   :  { %p537_p6 = por %p536_p5, %p535_p4 }
   0xe   :  { %p538_p7 = pnand %p537_p6, %p531_p3 }
  0x10   :  { %541 = shalt.err (!%p538_p7)
}
  0x11   :  { %17 = dma.hbm_to_vmem [thread:$0]  %s686_s0, 16, %s15_s7, [#allocation3]  }
  0x12   :  { %564 = dma.done.wait [#allocation3], 16  }
  0x13   :  { %565 = vsyncadd [#allocation3], 4294967280  ;;  %v22_v0 = vlaneseq  ;;  %v477_v5 = vld [vmem:[#allocation2] ss:$0 sm:$0xff]  ;;  %v569_v30 = vmov 683565275  }
  0x14   :  { %v570_v32 = vmov 2475754826   ;;  %v571_v34 = vmov 2131351028   ;;  %v572_v36 = vmov 2102212464  }
  0x15   :  { %v23_v1 = vshrl.u32 %v22_v0, 7  ;;  %v573_v38 = vmov 920167782   ;;  %v574_v46 = vmov 1326507024   ;;  %s575_s0 = smov [#allocation5]  }
  0x16   :  { %s465_s19 = sshll.u32 %s575_s0, 4  ;;  %s466_s19 = int_to_ptr.vmem [resolvable:$true] %s465_s19 }
  0x17   :  { %v24_v2 = vadd.s32 8, %v23_v1  ;;  %v28_v3 = vcvt.s32.f32 %v23_v1  ;;  %s542_s20 = scalar_lea.vmem %s466_s19, 256  ;;  %p547_p9 = scmp.lt.s32.totalorder %s466_s19, %s466_s19 }
  0x18   :  { %p543_p8 = scmp.ne.s32.totalorder %s466_s19, %s542_s20  ;;  %p548_p10 = scmp.lt.s32.totalorder %s542_s20, %s542_s20 }
  0x19   :  { %v29_v4 = vcvt.s32.f32 %v24_v2  ;;  %v601_v6 = vmul.f32 %v477_v5, %v28_v3 }
  0x1a   :  { %p549_p11 = por %p548_p10, %p547_p9 }
  0x1b   :  { %v603_v7 = vmul.f32 %v477_v5, %v29_v4  ;;  %v42_v8 = vand.u32 2147483647, %v601_v6  ;;  %v45_v9 = vand.u32 2139095040, %v601_v6  ;;  %vm44_vm14 = vcmp.lt.s32.totalorder %v601_v6, 0 }
  0x1c   :  { %p550_p12 = pnand %p549_p11, %p543_p8 }
  0x1d   :  { %v149_v10 = vand.u32 2139095040, %v603_v7  ;;  %v146_v11 = vand.u32 2147483647, %v603_v7  ;;  %v46_v12 = vshrl.u32 %v45_v9, 23  ;;  %v49_v13 = vand.u32 8388607, %v42_v8 }
  0x1e   :  { %vm43_vm15 = vcmp.le.f32.partialorder %v42_v8, 0.7853982 }
  0x1f   :  { %v150_v14 = vshrl.u32 %v149_v10, 23  ;;  %v153_v15 = vand.u32 8388607, %v146_v11  ;;  %v478_v16 = vadd.s32 4294967169, %v46_v12  ;;  %v50_v19 = vor.u32 8388608, %v49_v13 }
  0x21   :  { %v482_v17 = vadd.s32 4294967169, %v150_v14  ;;  %v52_v18 = vadd.s32 1, %v478_v16  ;;  %v154_v21 = vor.u32 8388608, %v153_v15  ;;  %v613_v26 = vshll.u32 %v50_v19, 8 }
  0x23   :  { %v156_v20 = vadd.s32 1, %v482_v17  ;;  %vm53_vm0 = vcmp.gt.s32.totalorder %v52_v18, 0  ;;  %v615_v28 = vshll.u32 %v154_v21, 8 }
  0x24   :  { %v54_v22 = vsel %vm53_vm0, %v52_v18, 0  ;;  %vm148_vm0 = vcmp.lt.s32.totalorder %v603_v7, 0 }
  0x25   :  { %vm157_vm1 = vcmp.gt.s32.totalorder %v156_v20, 0  ;;  %v55_v23 = vshrl.u32 %v54_v22, 5  ;;  %v56_v24 = vand.u32 31, %v54_v22 }
  0x26   :  { %v158_v25 = vsel %vm157_vm1, %v156_v20, 0  ;;  %vm147_vm1 = vcmp.le.f32.partialorder %v146_v11, 0.7853982 }
  0x27   :  { %v160_v27 = vand.u32 31, %v158_v25  ;;  %v57_v29 = vsub.s32 32, %v56_v24  ;;  %v59_v31 = vshll.u32 %v569_v30, %v56_v24  ;;  %v62_v33 = vshll.u32 %v570_v32, %v56_v24 }
  0x28   :  { %v65_v35 = vshll.u32 %v571_v34, %v56_v24  ;;  %v68_v37 = vshll.u32 %v572_v36, %v56_v24  ;;  %v71_v39 = vshll.u32 %v573_v38, %v56_v24  ;;  %vm74_vm2 = vcmp.lt.s32.totalorder %v55_v23, 1 }
  0x29   :  { %v617_v40 = vshrl.u32 %v158_v25, 5  ;;  %v58_v41 = vshrl.u32 %v569_v30, %v57_v29  ;;  %v60_v42 = vshrl.u32 %v570_v32, %v57_v29  ;;  %v63_v43 = vshrl.u32 %v571_v34, %v57_v29 }
  0x2a   :  { %v66_v44 = vshrl.u32 %v572_v36, %v57_v29  ;;  %v69_v45 = vshrl.u32 %v573_v38, %v57_v29  ;;  %v72_v47 = vshrl.u32 %v574_v46, %v57_v29  ;;  %vm75_vm3 = vcmp.lt.s32.totalorder %v55_v23, 2 }
  0x2b   :  { %vm77_vm4 = vcmp.lt.s32.totalorder %v55_v23, 4  ;;  %v61_v48 = vor.u32 %v60_v42, %v59_v31  ;;  %v64_v49 = vor.u32 %v63_v43, %v62_v33  ;;  %v161_v51 = vsub.s32 32, %v160_v27 }
  0x2c   :  { %v67_v50 = vor.u32 %v66_v44, %v65_v35  ;;  %v70_v52 = vor.u32 %v69_v45, %v68_v37  ;;  %v73_v53 = vor.u32 %v72_v47, %v71_v39  ;;  %vm76_vm5 = vcmp.lt.s32.totalorder %v55_v23, 3 }
  0x2d   :  { %v163_v54 = vshll.u32 %v569_v30, %v160_v27  ;;  %v78_v55 = vsel %vm74_vm2, %v58_v41, %v61_v48  ;;  %v82_v57 = vsel %vm74_vm2, %v61_v48, %v64_v49  ;;  %v166_v62 = vshll.u32 %v570_v32, %v160_v27 }
  0x2e   :  { %v79_v56 = vsel %vm77_vm4, %v67_v50, 2102212464  ;;  %v86_v58 = vsel %vm74_vm2, %v64_v49, %v67_v50  ;;  %v83_v60 = vsel %vm77_vm4, %v70_v52, 920167782  ;;  %v87_v61 = vsel %vm77_vm4, %v73_v53, 1326507024 }
  0x2f   :  { %v80_v59 = vsel %vm76_vm5, %v64_v49, %v79_v56  ;;  %v84_v63 = vsel %vm76_vm5, %v67_v50, %v83_v60  ;;  %v88_v1 = vsel %vm76_vm5, %v70_v52, %v87_v61  ;;  %v162_v2 = vshrl.u32 %v569_v30, %v161_v51 }
  0x30   :  { %v164_v3 = vshrl.u32 %v570_v32, %v161_v51  ;;  %v81_v4 = vsel %vm75_vm3, %v78_v55, %v80_v59  ;;  %v85_v5 = vsel %vm75_vm3, %v82_v57, %v84_v63  ;;  %v89_v9 = vsel %vm75_vm3, %v86_v58, %v88_v1 }
  0x31   :  { %v167_v10 = vshrl.u32 %v571_v34, %v161_v51  ;;  %v626_v12 = vmul.u32.u64.low %v613_v26, %v89_v9  ;;  %v627_v13 = vmul.u32.u64.high %v613_v26, %v89_v9, %v626_v12  ;;  %v169_v18 = vshll.u32 %v571_v34, %v160_v27 }
  0x32   :  { %v630_v14 = vmul.u32.u64.low %v613_v26, %v85_v5  ;;  %v631_v15 = vmul.u32.u64.high %v613_v26, %v85_v5, %v630_v14  ;;  %v165_v16 = vor.u32 %v164_v3, %v163_v54  ;;  %v170_v19 = vshrl.u32 %v572_v36, %v161_v51 }
  0x33   :  { %v168_v17 = vor.u32 %v167_v10, %v166_v62  ;;  %v172_v20 = vshll.u32 %v572_v36, %v160_v27  ;;  %v173_v21 = vshrl.u32 %v573_v38, %v161_v51  ;;  %v175_v22 = vshll.u32 %v573_v38, %v160_v27 }
  0x34   :  { %v176_v24 = vshrl.u32 %v574_v46, %v161_v51  ;;  %v97_v23 = vmul.u32 %v613_v26, %v81_v4  ;;  %v171_v25 = vor.u32 %v170_v19, %v169_v18  ;;  %vm178_vm6 = vcmp.lt.s32.totalorder %v617_v40, 1 }
  0x35   :  { %vm179_vm7 = vcmp.lt.s32.totalorder %v617_v40, 2  ;;  %vm99_vm8 = vc.u32 %v627_v13, %v630_v14  ;;  %v100_v29 = vadd.s32 1, %v631_v15  ;;  %v174_v30 = vor.u32 %v173_v21, %v172_v20 }
  0x36   :  { %vm180_vm9 = vcmp.lt.s32.totalorder %v617_v40, 3  ;;  %v177_v31 = vor.u32 %v176_v24, %v175_v22  ;;  %vm181_vm10 = vcmp.lt.s32.totalorder %v617_v40, 4  ;;  %v182_v32 = vsel %vm178_vm6, %v162_v2, %v165_v16 }
  0x37   :  { %v186_v27 = vsel %vm178_vm6, %v165_v16, %v168_v17  ;;  %v101_v33 = vsel %vm99_vm8, %v100_v29, %v631_v15  ;;  %v183_v26 = vsel %vm181_vm10, %v171_v25, 2102212464  ;;  %v187_v34 = vsel %vm181_vm10, %v174_v30, 920167782 }
  0x38   :  { %v190_v35 = vsel %vm178_vm6, %v168_v17, %v171_v25  ;;  %v102_v36 = vadd.s32 %v101_v33, %v97_v23  ;;  %v184_v37 = vsel %vm180_vm9, %v168_v17, %v183_v26  ;;  %v188_v38 = vsel %vm180_vm9, %v171_v25, %v187_v34 }
  0x39   :  { %v191_v39 = vsel %vm181_vm10, %v177_v31, 1326507024  ;;  %v185_v41 = vsel %vm179_vm7, %v182_v32, %v184_v37  ;;  %v189_v42 = vsel %vm179_vm7, %v186_v27, %v188_v38  ;;  %v98_v1 = vadd.s32 %v630_v14, %v627_v13 }
  0x3a   :  { %v192_v43 = vsel %vm180_vm9, %v174_v30, %v191_v39  ;;  %v103_v44 = vadd.s32 536870912, %v102_v36  ;;  %v648_v46 = vmul.u32.u64.low %v615_v28, %v189_v42  ;;  %v649_v47 = vmul.u32.u64.high %v615_v28, %v189_v42, %v648_v46 }
  0x3b   :  { %v193_v45 = vsel %vm179_vm7, %v190_v35, %v192_v43  ;;  %v201_v51 = vmul.u32 %v615_v28, %v185_v41  ;;  %vm134_vm8 = vweird.f32 %v601_v6 }
  0x3c   :  { %v652_v48 = vmul.u32.u64.low %v615_v28, %v193_v45  ;;  %v653_v49 = vmul.u32.u64.high %v615_v28, %v193_v45, %v652_v48  ;;  %v104_v50 = vshrl.u32 %v103_v44, 30  ;;  %v204_v53 = vadd.s32 1, %v649_v47 }
  0x3e   :  { %v105_v52 = vshll.u32 %v104_v50, 30  ;;  %vm203_vm11 = vc.u32 %v653_v49, %v648_v46  ;;  %v202_v21 = vadd.s32 %v648_v46, %v653_v49  ;;  %v128_v13 = vsub.s32 4, %v104_v50 }
  0x3f   :  { %v205_v40 = vsel %vm203_vm11, %v204_v53, %v649_v47 }
  0x40   :  { %v106_v54 = vsub.s32 %v102_v36, %v105_v52  ;;  %v206_v55 = vadd.s32 %v205_v40, %v201_v51  ;;  %v129_v27 = vsel %vm44_vm14, %v128_v13, %v104_v50  ;;  %v31_v51 = vand.u32 127, %v22_v0 }
  0x41   :  { %v131_v36 = vsel %vm43_vm15, 0, %v129_v27 }
  0x42   :  { %v108_v56 = vsub.s32 0, %v106_v54  ;;  %v207_v57 = vadd.s32 536870912, %v206_v55  ;;  %v135_v42 = vadd.s32 3, %v131_v36  ;;  %v343_v46 = vand.u32 3, %v131_v36 }
  0x43   :  { %vm41_vm9 = vcmp.lt.s32.totalorder %v31_v51, 64 }
  0x44   :  { %v479_v58 = vmin.u32 %v108_v56, %v106_v54  ;;  %v208_v59 = vshrl.u32 %v207_v57, 30  ;;  %v136_v45 = vand.u32 3, %v135_v42  ;;  %vm348_vm3 = vcmp.eq.s32.totalorder %v343_v46, 2 }
  0x45   :  { %vm345_vm5 = vcmp.eq.s32.totalorder %v343_v46, 0  ;;  %vm344_vm7 = vcmp.lt.s32.totalorder %v343_v46, 2 }
  0x46   :  { %v110_v60 = vclz %v479_v58  ;;  %v209_v61 = vshll.u32 %v208_v59, 30  ;;  %v232_v41 = vsub.s32 4, %v208_v59  ;;  %vm141_vm2 = vcmp.eq.s32.totalorder %v136_v45, 2 }
  0x47   :  { %vm138_vm4 = vcmp.eq.s32.totalorder %v136_v45, 0  ;;  %vm137_vm6 = vcmp.lt.s32.totalorder %v136_v45, 2 }
  0x48   :  { %v480_v62 = vadd.s32 4294967294, %v110_v60  ;;  %v210_v63 = vsub.s32 %v206_v55, %v209_v61  ;;  %v233_v44 = vsel %vm148_vm0, %v232_v41, %v208_v59 }
  0x49   :  { %v235_v49 = vsel %vm147_vm1, 0, %v233_v44 }
  0x4a   :  { %vm481_vm12 = vcmp.lt.s32.totalorder %v480_v62, 0  ;;  %v212_v2 = vsub.s32 0, %v210_v63  ;;  %v239_v11 = vadd.s32 3, %v235_v49  ;;  %v446_v60 = vand.u32 3, %v235_v49 }
  0x4b   :  { %v113_v28 = vsel %vm481_vm12, 0, %v480_v62 }
  0x4c   :  { %v114_v3 = vsub.s32 32, %v113_v28  ;;  %v115_v4 = vshll.u32 %v106_v54, %v113_v28  ;;  %v118_v5 = vsub.s32 4294967266, %v113_v28  ;;  %v483_v9 = vmin.u32 %v212_v2, %v210_v63 }
  0x4d   :  { %v240_v59 = vand.u32 3, %v239_v11  ;;  %vm451_vm11 = vcmp.eq.s32.totalorder %v446_v60, 2 }
  0x4e   :  { %v116_v10 = vshrl.u32 %v98_v1, %v114_v3  ;;  %v119_v12 = vadd.s32 127, %v118_v5  ;;  %v214_v15 = vclz %v483_v9 }
  0x4f   :  { %vm245_vm10 = vcmp.eq.s32.totalorder %v240_v59, 2  ;;  %vm242_vm12 = vcmp.eq.s32.totalorder %v240_v59, 0 }
  0x50   :  { %v117_v16 = vor.u32 %v116_v10, %v115_v4  ;;  %v120_v17 = vshll.u32 %v119_v12, 23  ;;  %v484_v18 = vadd.s32 4294967294, %v214_v15 }
  0x52   :  { %v121_v19 = vor.u32 4788187, %v120_v17  ;;  %v124_v20 = vcvt.s32.f32 %v117_v16  ;;  %vm485_vm13 = vcmp.lt.s32.totalorder %v484_v18, 0 }
  0x53   :  { %v217_v14 = vsel %vm485_vm13, 0, %v484_v18  ;;  %vm448_vm13 = vcmp.eq.s32.totalorder %v446_v60, 0 }
  0x54   :  { %v122_v22 = vand.u32 2147483647, %v121_v19  ;;  %v218_v24 = vsub.s32 32, %v217_v14  ;;  %v219_v23 = vshll.u32 %v210_v63, %v217_v14  ;;  %v222_v25 = vsub.s32 4294967266, %v217_v14 }
  0x56   :  { %v125_v29 = vmul.f32 %v124_v20, %v122_v22  ;;  %v220_v30 = vshrl.u32 %v202_v21, %v218_v24  ;;  %v223_v31 = vadd.s32 127, %v222_v25 }
  0x58   :  { %v126_v32 = vxor.u32 2147483648, %v125_v29  ;;  %v221_v33 = vor.u32 %v220_v30, %v219_v23  ;;  %v224_v26 = vshll.u32 %v223_v31, 23 }
  0x5a   :  { %v127_v34 = vsel %vm44_vm14, %v126_v32, %v125_v29  ;;  %v225_v37 = vor.u32 4788187, %v224_v26  ;;  %v228_v38 = vcvt.s32.f32 %v221_v33  ;;  %vm241_vm14 = vcmp.lt.s32.totalorder %v240_v59, 2 }
  0x5b   :  { %v130_v35 = vsel %vm43_vm15, %v601_v6, %v127_v34  ;;  %vm447_vm15 = vcmp.lt.s32.totalorder %v446_v60, 2 }
  0x5c   :  { %512 = vcosq.f32 %v130_v35  ;;  %v226_v39 = vand.u32 2147483647, %v225_v37 }
  0x5d   :  { %514 = vsinq.f32 %v130_v35 }
  0x5e   :  { %v229_v43 = vmul.f32 %v228_v38, %v226_v39 }
  0x60   :  { %v230_v8 = vxor.u32 2147483648, %v229_v43 }
  0x62   :  { %v231_v47 = vsel %vm148_vm0, %v230_v8, %v229_v43  ;;  %vm238_vm0 = vweird.f32 %v603_v7 }
  0x63   :  { %v234_v48 = vsel %vm147_vm1, %v603_v7, %v231_v47 }
  0x64   :  { %516 = vcosq.f32 %v234_v48 }
  0x65   :  { %518 = vsinq.f32 %v234_v48 }
  0x66   :  { %v513_v50 = vpop.eup %512 }
  0x67   :  { %v515_v52 = vpop.eup %514  ;;  %v142_v53 = vxor.u32 2147483648, %v513_v50 }
  0x68   :  { %v139_v54 = vxor.u32 2147483648, %v515_v52 }
  0x69   :  { %v143_v40 = vsel %vm141_vm2, %v142_v53, %v515_v52  ;;  %v350_v55 = vsel %vm348_vm3, %v142_v53, %v515_v52 }
  0x6a   :  { %v140_v56 = vsel %vm138_vm4, %v513_v50, %v139_v54  ;;  %v347_v57 = vsel %vm345_vm5, %v513_v50, %v139_v54 }
  0x6b   :  { %v144_v58 = vsel %vm137_vm6, %v140_v56, %v143_v40  ;;  %v351_v0 = vsel %vm344_vm7, %v347_v57, %v350_v55 }
  0x6c   :  { %v145_v61 = vsel %vm134_vm8, nan, %v144_v58  ;;  %v352_v62 = vsel %vm134_vm8, nan, %v351_v0 }
  0x6d   :  { %v456_v63 = vsel %vm41_vm9, %v145_v61, %v352_v62 }
  0x6e   :  { %458 = vst [vmem:[#allocation5] sm:$0xff] %v456_v63  ;;  %v517_v1 = vpop.eup %516 }
  0x6f   :  { %v519_v28 = vpop.eup %518  ;;  %v246_v6 = vxor.u32 2147483648, %v517_v1 }
  0x70   :  { %v243_v2 = vxor.u32 2147483648, %v519_v28 }
  0x71   :  { %v247_v3 = vsel %vm245_vm10, %v246_v6, %v519_v28  ;;  %v453_v4 = vsel %vm451_vm11, %v246_v6, %v519_v28 }
  0x72   :  { %v244_v5 = vsel %vm242_vm12, %v517_v1, %v243_v2  ;;  %v450_v9 = vsel %vm448_vm13, %v517_v1, %v243_v2 }
  0x73   :  { %v248_v10 = vsel %vm241_vm14, %v244_v5, %v247_v3  ;;  %v454_v12 = vsel %vm447_vm15, %v450_v9, %v453_v4 }
  0x74   :  { %v249_v15 = vsel %vm238_vm0, nan, %v248_v10  ;;  %v455_v16 = vsel %vm238_vm0, nan, %v454_v12 }
  0x75   :  { %v457_v17 = vsel %vm41_vm9, %v249_v15, %v455_v16 }
  0x76   :  { %459 = vst [vmem:[#allocation5 + $0x8] sm:$0xff] %v457_v17 }
  0x77   :  { %553 = shalt.err (!%p550_p12)
}
  0x78   :  { %s554_s23 = scalar_lea.hbm %s687_s1, 256 }
  0x79   :  { %p555_p13 = scmp.ne.s32.totalorder %s687_s1, %s554_s23  ;;  %p558_p0 = scmp.lt.u32.totalorder %s554_s23, %s687_s1 }
  0x7b   :  { %p560_p1 = pnand %p558_p0, %p555_p13 }
  0x7d   :  { %563 = shalt.err (!%p560_p1)
}
  0x7e   :  { %s576_s28 = smov 128   ;;  %s577_s29 = smov 8  }
  0x7f   :  { %471 = dma.vmem_to_hbm [thread:$0]  %s466_s19, 256, %s687_s1, [#allocation4], %s576_s28, %s576_s28, %s577_s29  }
  0x80   :  { %566 = dma.done.wait [#allocation4], 256  }
  0x81   :  { %567 = vsyncadd [#allocation4], 4294967040 }
  0x82   :  { %475 = vsyncpa [#allocation3], 1 }
  0x83   :  { %476 = vsyncpa [#allocation4], 1 }

</bundles_post_ra>
